<compile_context>
chip_gen: v6e
topology: v6e:2x2x1
jax: 0.10.0
libtpu: 0.0.40
codegen_flags: <defaults>
</compile_context>

<pallas_src>
import functools
import math

import jax
import jax.numpy as jnp
from jax import lax
from jax.experimental import pallas as pl
from jax.experimental.pallas import tpu as pltpu

LN_EPS = 1e-5
_INV_SQRT2 = 1.0 / math.sqrt(2.0)


def _cdiv(a, b):
    return (a + b - 1) // b


def _round_up(x, m):
    return ((x + m - 1) // m) * m


def _sublane_pack(dtype):
    # Rows per packed sublane group: f32 -> 8, bf16 -> 16, int8/fp8 -> 32.
    return max(8, 32 // jnp.dtype(dtype).itemsize)


@functools.lru_cache(maxsize=1)
def _device_params():
    """Per-generation VMEM budget (tile sizing), scoped limit, tile defaults."""
    try:
        kind = jax.devices()[0].device_kind.lower()
    except Exception:
        kind = ""
    if "v2" in kind or "v3" in kind:
        return {"budget": 10 << 20, "limit": 14 << 20, "base_tm": 256, "two_tc": False}
    if "v5" in kind:  # v5e: 128 MiB physical VMEM, 128-wide MXU
        return {"budget": 76 << 20, "limit": 96 << 20, "base_tm": 256, "two_tc": False}
    if "v4" in kind or "v6" in kind:  # 128 MiB physical VMEM
        return {"budget": 76 << 20, "limit": 96 << 20, "base_tm": 512, "two_tc": False}
    # v7x / unknown: conservative — 64 MiB physical VMEM, 2 TensorCores.
    return {"budget": 32 << 20, "limit": 40 << 20, "base_tm": 512, "two_tc": True}


@functools.lru_cache(maxsize=1)
def _buffered_one_supported():
    """One-time capability probe: can a resident (constant index_map) input be
    single-buffered via pipeline_mode=pl.Buffered(1)?  Verified for correctness
    so a bad lowering never silently corrupts the real kernel."""
    try:
        def probe(a_ref, c_ref, o_ref):
            o_ref[...] = a_ref[...] + c_ref[...]

        f = pl.pallas_call(
            probe,
            out_shape=jax.ShapeDtypeStruct((8, 128), jnp.float32),
            grid_spec=pltpu.PrefetchScalarGridSpec(
                num_scalar_prefetch=0,
                grid=(1,),
                in_specs=[
                    pl.BlockSpec((8, 128), lambda i: (0, 0)),
                    pl.BlockSpec((8, 128), lambda i: (0, 0),
                                 pipeline_mode=pl.Buffered(1)),
                ],
                out_specs=pl.BlockSpec((8, 128), lambda i: (0, 0)),
            ),
        )
        a = jnp.full((8, 128), 1.5, jnp.float32)
        c = jnp.full((8, 128), 2.0, jnp.float32)
        out = jax.block_until_ready(f(a, c))
        return bool(jnp.allclose(out, 3.5))
    except Exception:
        return False


# ----------------------------------------------------------------------------
# Kernel bodies
# ----------------------------------------------------------------------------
def _gelu_layernorm(y, gamma, beta):
    """Exact erf GELU + LayerNorm over the last axis.  All inputs f32.

    One-pass moments: var = E[g^2] - mean^2 — the two cross-lane reductions
    are independent (no serial XLU dependence, one fewer (tm, E) temporary).
    """
    g = 0.5 * y * (1.0 + lax.erf(y * _INV_SQRT2))
    inv_e = 1.0 / g.shape[-1]
    mean = jnp.sum(g, axis=-1, keepdims=True) * inv_e
    mean_sq = jnp.sum(g * g, axis=-1, keepdims=True) * inv_e
    var = jnp.maximum(mean_sq - mean * mean, 0.0)
    return (g - mean) * lax.rsqrt(var + LN_EPS) * gamma + beta


def _fused_kernel(x_ref, w_ref, b_ref, g_ref, beta_ref, o_ref, *, n_sub, precision):
    """Resident-W path: one (tm, E) row tile per grid step.

    The row tile is processed in `n_sub` independent sub-chunks inside a single
    basic block, so the LLO scheduler is free to overlap chunk c+1's vmatmul
    pushes (vector-extended slot) with chunk c's erf/LayerNorm VPU+EUP work.
    """
    tm = x_ref.shape[0]
    sub = tm // n_sub
    for c in range(n_sub):
        rows = pl.ds(c * sub, sub)
        y = jnp.dot(x_ref[rows, :], w_ref[...],
                    preferred_element_type=jnp.float32,
                    precision=precision)
        y = y + b_ref[...]                       # bias already f32 (1, E)
        o_ref[rows, :] = _gelu_layernorm(y, g_ref[...], beta_ref[...]).astype(o_ref.dtype)


def _fused_kernel_ktiled(x_ref, w_ref, b_ref, g_ref, beta_ref, o_ref, acc_ref, *,
                         precision):
    """Streamed-W path: grid = (row tiles, K tiles), f32 accumulator scratch."""
    k = pl.program_id(1)

    partial_sum = jnp.dot(x_ref[...], w_ref[...],
                          preferred_element_type=jnp.float32,
                          precision=precision)

    @pl.when(k == 0)
    def _():
        acc_ref[...] = partial_sum

    @pl.when(k > 0)
    def _():
        acc_ref[...] = acc_ref[...] + partial_sum

    @pl.when(k == pl.num_programs(1) - 1)
    def _():
        y = acc_ref[...] + b_ref[...]
        o_ref[...] = _gelu_layernorm(y, g_ref[...], beta_ref[...]).astype(o_ref.dtype)


# ----------------------------------------------------------------------------
# Tile-size selection
# ----------------------------------------------------------------------------
def _pick_k_tile(hidden, embedding, w_dtype, params, forced_tk):
    """Decide whether (and how) to stream W over a K grid axis."""
    if forced_tk is not None:
        if forced_tk >= hidden:
            return hidden, False
        if hidden % forced_tk != 0 or forced_tk % 128 != 0:
            raise ValueError("tk must be a multiple of 128 that divides hidden")
        return int(forced_tk), True

    bw = jnp.dtype(w_dtype).itemsize
    w_bytes = hidden * embedding * bw
    if w_bytes <= params["budget"] // 3 or hidden % 128 != 0:
        # TODO(synk): very large W whose hidden is not a multiple of 128 falls
        # back to shrinking tm instead of K-tiling.
        return hidden, False

    slab_budget = params["budget"] // 3
    best = None
    t = 128
    while t < hidden:
        if hidden % t == 0 and 2 * t * embedding * bw <= slab_budget:
            best = t
        t += 128
    if best is None:
        best = 128  # TODO(synk): if even a 128-row W slab overflows VMEM, tile E too.
    return best, True


def _pick_row_tile(M, hidden, embedding, x_dtype, w_dtype, out_dtype,
                   params, w_buffers, k_tiled, tk, pack):
    """Row tile sized for the MXU and an honest per-generation VMEM budget."""
    bx = jnp.dtype(x_dtype).itemsize
    bw = jnp.dtype(w_dtype).itemsize
    bo = jnp.dtype(out_dtype).itemsize

    if k_tiled:
        fixed = 2 * tk * embedding * bw                      # streamed W K-slabs (2 bufs)
        per_row = (2 * tk * bx                               # x tile (2 bufs)
                   + 2 * embedding * bo                      # out tile (2 bufs)
                   + embedding * 4                           # f32 accumulator scratch
                   + 4 * embedding * 4)                      # live f32 epilogue temps
    else:
        fixed = w_buffers * hidden * embedding * bw          # resident W
        per_row = (2 * hidden * bx
                   + 2 * embedding * bo
                   + 4 * embedding * 4)                      # live f32 epilogue temps
    fixed += 6 * embedding * 4                               # bias / gamma / beta (f32)

    room = max(params["budget"] - fixed, 4 * pack * per_row)
    tm_cap = max(pack, (room // per_row) // pack * pack)

    tm = min(params["base_tm"], tm_cap)
    tm = min(tm, _round_up(M, pack))                         # don't over-pad tiny inputs

    # v7x megacore: keep >= 2 (ideally 8) row-grid steps so both TCs get work.
    if params["two_tc"] and M > 2 * pack:
        steps = max(2, min(8, M // pack))
        tm = min(tm, _round_up(_cdiv(M, steps), pack))

    return max(pack, (int(tm) // pack) * pack)


def _pick_n_sub(tm, pack):
    """2-4 row sub-chunks (each >= 128 rows, sublane-aligned) for MXU/VPU overlap."""
    for cand in (4, 2):
        sub = tm // cand
        if tm % cand == 0 and sub % pack == 0 and sub >= 128:
            return cand
    return 1


# ----------------------------------------------------------------------------
# pallas_call construction + public wrapper
# ----------------------------------------------------------------------------
def _build_call(M, hidden, embedding, tm, tk, out_dtype, n_sub, precision,
                single_buffer_w, params):
    nm = _cdiv(M, tm)

    if tk < hidden:
        nk = hidden // tk
        kern = functools.partial(_fused_kernel_ktiled, precision=precision)
        grid_spec = pltpu.PrefetchScalarGridSpec(
            num_scalar_prefetch=0,
            grid=(nm, nk),
            in_specs=[
                pl.BlockSpec((tm, tk), lambda i, k: (i, k)),           # x K-slab
                pl.BlockSpec((tk, embedding), lambda i, k: (k, 0)),    # W K-slab
                pl.BlockSpec((1, embedding), lambda i, k: (0, 0)),     # bias (f32)
                pl.BlockSpec((1, embedding), lambda i, k: (0, 0)),     # gamma (f32)
                pl.BlockSpec((1, embedding), lambda i, k: (0, 0)),     # beta (f32)
            ],
            out_specs=pl.BlockSpec((tm, embedding), lambda i, k: (i, 0)),
            scratch_shapes=[pltpu.VMEM((tm, embedding), jnp.float32)],
        )
        semantics = ("parallel", "arbitrary")
    else:
        resident = {"pipeline_mode": pl.Buffered(1)} if single_buffer_w else {}
        kern = functools.partial(_fused_kernel, n_sub=n_sub, precision=precision)
        grid_spec = pltpu.PrefetchScalarGridSpec(
            num_scalar_prefetch=0,
            grid=(nm,),
            in_specs=[
                pl.BlockSpec((tm, hidden), lambda i: (i, 0)),                    # x tile
                pl.BlockSpec((hidden, embedding), lambda i: (0, 0), **resident),  # W
                pl.BlockSpec((1, embedding), lambda i: (0, 0), **resident),       # bias
                pl.BlockSpec((1, embedding), lambda i: (0, 0), **resident),       # gamma
                pl.BlockSpec((1, embedding), lambda i: (0, 0), **resident),       # beta
            ],
            out_specs=pl.BlockSpec((tm, embedding), lambda i: (i, 0)),
        )
        semantics = ("parallel",)

    return pl.pallas_call(
        kern,
        out_shape=jax.ShapeDtypeStruct((M, embedding), out_dtype),
        grid_spec=grid_spec,
        compiler_params=pltpu.CompilerParams(
            dimension_semantics=semantics,
            vmem_limit_bytes=params["limit"],
        ),
    )


def bert_mlm_head_transform(x, w, b, gamma, beta, *, tm=None, tk=None,
                            out_dtype=None, mxu_dtype=None):
    """x: [batch, seq, hidden] -> LayerNorm(GELU(x @ W + b)): [batch, seq, E].

    mxu_dtype: optional (e.g. jnp.bfloat16) cast of x/W before the matmul for
    MXU-native bf16 throughput; f32 inputs otherwise use HIGHEST precision.
    """
    batch, seq, hidden = x.shape
    hw, embedding = w.shape
    assert hw == hidden, "weight must be [hidden, embedding]"
    M = batch * seq
    if out_dtype is None:
        out_dtype = x.dtype

    if mxu_dtype is not None:
        x = x.astype(mxu_dtype)
        w = w.astype(mxu_dtype)

    f32 = jnp.dtype(jnp.float32)
    precision = (lax.Precision.HIGHEST
                 if jnp.dtype(x.dtype) == f32 and jnp.dtype(w.dtype) == f32
                 else None)

    params = _device_params()
    pack = _sublane_pack(x.dtype)

    tk_eff, k_tiled = _pick_k_tile(hidden, embedding, w.dtype, params, tk)
    single_buffer_w = (not k_tiled) and _buffered_one_supported()
    w_buffers = 1 if single_buffer_w else 2

    if tm is None:
        tm = _pick_row_tile(M, hidden, embedding, x.dtype, w.dtype, out_dtype,
                            params, w_buffers, k_tiled, tk_eff, pack)
    tm = max(pack, (int(tm) // pack) * pack)
    tm = min(tm, _round_up(M, pack))

    n_sub = 1 if k_tiled else _pick_n_sub(tm, pack)

    # No padding / slicing of the activation streams: grid = cdiv(M, tm) and the
    # ragged last row-block is masked by Pallas on the output write.
    x2d = x.reshape(M, hidden)
    b2d = b.reshape(1, embedding).astype(jnp.float32)
    gamma2d = gamma.reshape(1, embedding).astype(jnp.float32)
    beta2d = beta.reshape(1, embedding).astype(jnp.float32)

    call = _build_call(M, hidden, embedding, tm, tk_eff, out_dtype, n_sub,
                       precision, single_buffer_w, params)
    out2d = call(x2d, w, b2d, gamma2d, beta2d)
    return out2d.reshape(batch, seq, embedding)


# ----------------------------------------------------------------------------
# Pure-JAX reference of the PyTorch module's forward
# ----------------------------------------------------------------------------
def reference(x, w, b, gamma, beta):
    y = jnp.einsum("bsh,he->bse", x, w, precision=lax.Precision.HIGHEST) + b
    g = 0.5 * y * (1.0 + lax.erf(y * _INV_SQRT2))
    mean = jnp.mean(g, axis=-1, keepdims=True)
    var = jnp.mean((g - mean) ** 2, axis=-1, keepdims=True)
    normed = (g - mean) / jnp.sqrt(var + LN_EPS)
    return normed * gamma + beta


if __name__ == "__main__":
    # --- Test 1: module-default small shapes (resident-W path, single grid step).
    batch, seq, hidden = 2, 8, 32
    embedding = hidden  # embedding_size = hidden_size (module default)

    key = jax.random.PRNGKey(0)
    kx, kw = jax.random.split(key)
    x = jax.random.normal(kx, (batch, seq, hidden), dtype=jnp.float32)

    # Deterministic parameter init (xavier_uniform FFN weight, zero bias;
    # LayerNorm weight=1, bias=0 per __reset_parameters).
    limit = math.sqrt(6.0 / (hidden + embedding))
    w = jax.random.uniform(kw, (hidden, embedding), dtype=jnp.float32,
                           minval=-limit, maxval=limit)
    b = jnp.zeros((embedding,), dtype=jnp.float32)
    gamma = jnp.ones((embedding,), dtype=jnp.float32)
    beta = jnp.zeros((embedding,), dtype=jnp.float32)

    # TODO(synk): dropout rate is None in the module config -> no-op, not implemented.

    out = jax.block_until_ready(bert_mlm_head_transform(x, w, b, gamma, beta))
    ref = reference(x, w, b, gamma, beta)
    assert out.shape == (batch, seq, embedding)
    assert jnp.allclose(out, ref, atol=1e-5, rtol=1e-5), "mismatch vs reference (test 1)"

    # --- Test 2: exercises the K-tiled accumulator path + ragged row grid.
    batch2, seq2, hidden2 = 2, 24, 256
    embedding2 = 256
    k2x, k2w, k2b = jax.random.split(jax.random.PRNGKey(1), 3)
    x2 = jax.random.normal(k2x, (batch2, seq2, hidden2), dtype=jnp.float32)
    limit2 = math.sqrt(6.0 / (hidden2 + embedding2))
    w2 = jax.random.uniform(k2w, (hidden2, embedding2), dtype=jnp.float32,
                            minval=-limit2, maxval=limit2)
    b2 = 0.01 * jax.random.normal(k2b, (embedding2,), dtype=jnp.float32)
    gamma2 = jnp.full((embedding2,), 1.1, dtype=jnp.float32)
    beta2 = jnp.full((embedding2,), 0.05, dtype=jnp.float32)

    out2 = jax.block_until_ready(
        bert_mlm_head_transform(x2, w2, b2, gamma2, beta2, tm=32, tk=128))
    ref2 = reference(x2, w2, b2, gamma2, beta2)
    assert out2.shape == (batch2, seq2, embedding2)
    assert jnp.allclose(out2, ref2, atol=5e-5, rtol=5e-5), "mismatch vs reference (test 2)"

    print("KERNEL_OK")
</pallas_src>

<mosaic_0001>
module attributes {stable_mosaic.version = 11 : i64} {
  func.func @probe(%arg0: i32, %arg1: memref<8x128xf32, #tpu.memory_space<vmem>>, %arg2: memref<8x128xf32, #tpu.memory_space<vmem>>, %arg3: memref<8x128xf32, #tpu.memory_space<vmem>>) attributes {dimension_semantics = [#tpu.dimension_semantics<arbitrary>], iteration_bounds = array<i64: 1>, scalar_prefetch = 0 : i64, scratch_operands = 0 : i64, tpu.core_type = #tpu.core_type<tc>, window_params = [{pipeline_mode = #tpu.pipeline_mode<synchronous>, transform_indices = @transform_0, window_bounds = array<i64: 8, 128>}, {pipeline_mode = #tpu.pipeline_mode<synchronous>, transform_indices = @transform_1, window_bounds = array<i64: 8, 128>}, {pipeline_mode = #tpu.pipeline_mode<synchronous>, transform_indices = @transform_2, window_bounds = array<i64: 8, 128>}]} {
    %c0 = arith.constant 0 : index
    %c0_0 = arith.constant 0 : index
    %0 = vector.load %arg1[%c0, %c0_0] : memref<8x128xf32, #tpu.memory_space<vmem>>, vector<8x128xf32>
    %c0_1 = arith.constant 0 : index
    %c0_2 = arith.constant 0 : index
    %1 = vector.load %arg2[%c0_1, %c0_2] : memref<8x128xf32, #tpu.memory_space<vmem>>, vector<8x128xf32>
    %2 = arith.addf %0, %1 : vector<8x128xf32>
    %c0_3 = arith.constant 0 : index
    %c0_4 = arith.constant 0 : index
    %3 = vector.load %arg3[%c0_3, %c0_4] : memref<8x128xf32, #tpu.memory_space<vmem>>, vector<8x128xf32>
    tpu.vector_store %arg3[%c0_3, %c0_4], %2 {strides = array<i32>} : memref<8x128xf32, #tpu.memory_space<vmem>>, vector<8x128xf32>,
    return
  }
  func.func @transform_0(%arg0: i32) -> (i32, i32) {
    %c0_i32 = arith.constant 0 : i32
    %c0_i32_0 = arith.constant 0 : i32
    %c0_i32_1 = arith.constant 0 : i32
    return %c0_i32, %c0_i32_0 : i32, i32
  }
  func.func @transform_1(%arg0: i32) -> (i32, i32) {
    %c0_i32 = arith.constant 0 : i32
    %c0_i32_0 = arith.constant 0 : i32
    %c0_i32_1 = arith.constant 0 : i32
    return %c0_i32, %c0_i32_0 : i32, i32
  }
  func.func @transform_2(%arg0: i32) -> (i32, i32) {
    %c0_i32 = arith.constant 0 : i32
    %c0_i32_0 = arith.constant 0 : i32
    %c0_i32_1 = arith.constant 0 : i32
    return %c0_i32, %c0_i32_0 : i32, i32
  }
}

module attributes {stable_mosaic.version = 11 : i64} {
  func.func @_fused_kernel(%arg0: i32, %arg1: memref<16x32xf32, #tpu.memory_space<vmem>>, %arg2: memref<32x32xf32, #tpu.memory_space<vmem>>, %arg3: memref<1x32xf32, #tpu.memory_space<vmem>>, %arg4: memref<1x32xf32, #tpu.memory_space<vmem>>, %arg5: memref<1x32xf32, #tpu.memory_space<vmem>>, %arg6: memref<16x32xf32, #tpu.memory_space<vmem>>) attributes {dimension_semantics = [#tpu.dimension_semantics<parallel>], iteration_bounds = array<i64: 1>, scalar_prefetch = 0 : i64, scratch_operands = 0 : i64, tpu.core_type = #tpu.core_type<tc>, window_params = [{transform_indices = @transform_0, window_bounds = array<i64: 16, 32>}, {pipeline_mode = #tpu.pipeline_mode<synchronous>, transform_indices = @transform_1, window_bounds = array<i64: 32, 32>}, {pipeline_mode = #tpu.pipeline_mode<synchronous>, transform_indices = @transform_2, window_bounds = array<i64: 1, 32>}, {pipeline_mode = #tpu.pipeline_mode<synchronous>, transform_indices = @transform_3, window_bounds = array<i64: 1, 32>}, {pipeline_mode = #tpu.pipeline_mode<synchronous>, transform_indices = @transform_4, window_bounds = array<i64: 1, 32>}, {transform_indices = @transform_5, window_bounds = array<i64: 16, 32>}]} {
    %c0 = arith.constant 0 : index
    %c0_0 = arith.constant 0 : index
    %0 = vector.load %arg1[%c0, %c0_0] : memref<16x32xf32, #tpu.memory_space<vmem>>, vector<16x32xf32>
    %c0_1 = arith.constant 0 : index
    %c0_2 = arith.constant 0 : index
    %1 = vector.load %arg2[%c0_1, %c0_2] : memref<32x32xf32, #tpu.memory_space<vmem>>, vector<32x32xf32>
    %cst = arith.constant dense<0.000000e+00> : vector<16x32xf32>
    %2 = tpu.matmul %0, %1, %cst {dimension_numbers = #tpu.dot_dimension_numbers<[1], [0], [0], [1], [0, 0, 1, 1], [], []>, precision = #tpu.contract_precision<fp32>} : vector<16x32xf32>, vector<32x32xf32>, vector<16x32xf32> -> vector<16x32xf32>
    %c0_3 = arith.constant 0 : index
    %c0_4 = arith.constant 0 : index
    %3 = vector.load %arg3[%c0_3, %c0_4] : memref<1x32xf32, #tpu.memory_space<vmem>>, vector<1x32xf32>
    %4 = vector.broadcast %3 : vector<1x32xf32> to vector<16x32xf32>
    %5 = arith.addf %2, %4 : vector<16x32xf32>
    %c0_5 = arith.constant 0 : index
    %c0_6 = arith.constant 0 : index
    %6 = vector.load %arg4[%c0_5, %c0_6] : memref<1x32xf32, #tpu.memory_space<vmem>>, vector<1x32xf32>
    %c0_7 = arith.constant 0 : index
    %c0_8 = arith.constant 0 : index
    %7 = vector.load %arg5[%c0_7, %c0_8] : memref<1x32xf32, #tpu.memory_space<vmem>>, vector<1x32xf32>
    %cst_9 = arith.constant 5.000000e-01 : f32
    %8 = vector.broadcast %cst_9 : f32 to vector<16x32xf32>
    %9 = arith.mulf %8, %5 : vector<16x32xf32>
    %cst_10 = arith.constant 0.707106769 : f32
    %10 = vector.broadcast %cst_10 : f32 to vector<16x32xf32>
    %11 = arith.mulf %5, %10 : vector<16x32xf32>
    %12 = math.erf %11 : vector<16x32xf32>
    %cst_11 = arith.constant 1.000000e+00 : f32
    %13 = vector.broadcast %cst_11 : f32 to vector<16x32xf32>
    %14 = arith.addf %13, %12 : vector<16x32xf32>
    %15 = arith.mulf %9, %14 : vector<16x32xf32>
    %cst_12 = arith.constant dense<0.000000e+00> : vector<16xf32>
    %16 = vector.multi_reduction <add>, %15, %cst_12 [1] : vector<16x32xf32> to vector<16xf32>
    %17 = vector.shape_cast %16 : vector<16xf32> to vector<16x1xf32>
    %cst_13 = arith.constant 3.125000e-02 : f32
    %18 = vector.broadcast %cst_13 : f32 to vector<16x1xf32>
    %19 = arith.mulf %17, %18 : vector<16x1xf32>
    %20 = arith.mulf %15, %15 : vector<16x32xf32>
    %cst_14 = arith.constant dense<0.000000e+00> : vector<16xf32>
    %21 = vector.multi_reduction <add>, %20, %cst_14 [1] : vector<16x32xf32> to vector<16xf32>
    %22 = vector.shape_cast %21 : vector<16xf32> to vector<16x1xf32>
    %cst_15 = arith.constant 3.125000e-02 : f32
    %23 = vector.broadcast %cst_15 : f32 to vector<16x1xf32>
    %24 = arith.mulf %22, %23 : vector<16x1xf32>
    %25 = arith.mulf %19, %19 : vector<16x1xf32>
    %26 = arith.subf %24, %25 : vector<16x1xf32>
    %cst_16 = arith.constant 0.000000e+00 : f32
    %27 = vector.broadcast %cst_16 : f32 to vector<16x1xf32>
    %28 = arith.maximumf %26, %27 : vector<16x1xf32>
    %29 = vector.broadcast %19 : vector<16x1xf32> to vector<16x32xf32>
    %30 = arith.subf %15, %29 : vector<16x32xf32>
    %cst_17 = arith.constant 9.99999974E-6 : f32
    %31 = vector.broadcast %cst_17 : f32 to vector<16x1xf32>
    %32 = arith.addf %28, %31 : vector<16x1xf32>
    %33 = math.rsqrt %32 : vector<16x1xf32>
    %34 = vector.broadcast %33 : vector<16x1xf32> to vector<16x32xf32>
    %35 = arith.mulf %30, %34 : vector<16x32xf32>
    %36 = vector.broadcast %6 : vector<1x32xf32> to vector<16x32xf32>
    %37 = arith.mulf %35, %36 : vector<16x32xf32>
    %38 = vector.broadcast %7 : vector<1x32xf32> to vector<16x32xf32>
    %39 = arith.addf %37, %38 : vector<16x32xf32>
    %c0_18 = arith.constant 0 : index
    %c0_19 = arith.constant 0 : index
    %40 = vector.load %arg6[%c0_18, %c0_19] : memref<16x32xf32, #tpu.memory_space<vmem>>, vector<16x32xf32>
    tpu.vector_store %arg6[%c0_18, %c0_19], %39 {strides = array<i32>} : memref<16x32xf32, #tpu.memory_space<vmem>>, vector<16x32xf32>,
    return
  }
  func.func @transform_0(%arg0: i32) -> (i32, i32) {
    %c0_i32 = arith.constant 0 : i32
    %c0_i32_0 = arith.constant 0 : i32
    return %arg0, %c0_i32 : i32, i32
  }
  func.func @transform_1(%arg0: i32) -> (i32, i32) {
    %c0_i32 = arith.constant 0 : i32
    %c0_i32_0 = arith.constant 0 : i32
    %c0_i32_1 = arith.constant 0 : i32
    return %c0_i32, %c0_i32_0 : i32, i32
  }
  func.func @transform_2(%arg0: i32) -> (i32, i32) {
    %c0_i32 = arith.constant 0 : i32
    %c0_i32_0 = arith.constant 0 : i32
    %c0_i32_1 = arith.constant 0 : i32
    return %c0_i32, %c0_i32_0 : i32, i32
  }
  func.func @transform_3(%arg0: i32) -> (i32, i32) {
    %c0_i32 = arith.constant 0 : i32
    %c0_i32_0 = arith.constant 0 : i32
    %c0_i32_1 = arith.constant 0 : i32
    return %c0_i32, %c0_i32_0 : i32, i32
  }
  func.func @transform_4(%arg0: i32) -> (i32, i32) {
    %c0_i32 = arith.constant 0 : i32
    %c0_i32_0 = arith.constant 0 : i32
    %c0_i32_1 = arith.constant 0 : i32
    return %c0_i32, %c0_i32_0 : i32, i32
  }
  func.func @transform_5(%arg0: i32) -> (i32, i32) {
    %c0_i32 = arith.constant 0 : i32
    %c0_i32_0 = arith.constant 0 : i32
    return %arg0, %c0_i32 : i32, i32
  }
}

</mosaic_0001>

<bundles_post_ra>
// kernel: tpu_custom_call.1
= control target key start
LH: loop header
LB: loop body
LE: loop exit
PB: predicated region body
PF: predicated region fallthrough
CT: control target
= control target key end

     0   :  { %7 = vsyncpa [#allocation3], 0  ;;  %s152_s0 = inlined_call_operand.hbm [shape: f32[8,128], index: 0, kind: input, shape index: {}]   ;;  %s153_s1 = inlined_call_operand.hbm [shape: f32[8,128], index: 1, kind: input, shape index: {}]   ;;  %s154_s2 = inlined_call_operand.hbm [shape: f32[8,128], index: 2, kind: output, shape index: {}]  }
   0x1   :  { %8 = vsyncpa [#allocation6], 0 }
   0x2   :  { %9 = vsyncpa [#allocation4], 0  ;;  %s125_s9 = smov [#allocation2]   ;;  %s126_s11 = smov [#allocation5]  }
   0x3   :  { %s16_s10 = sshll.u32 %s125_s9, 4  ;;  %s26_s12 = sshll.u32 %s126_s11, 4  ;;  %s17_s10 = int_to_ptr.vmem [resolvable:$true] %s16_s10  ;;  %s27_s12 = int_to_ptr.vmem [resolvable:$true] %s26_s12 }
   0x4   :  { %s67_s13 = scalar_lea.vmem %s17_s10, 128  ;;  %p72_p1 = scmp.lt.s32.totalorder %s17_s10, %s17_s10 }
   0x5   :  { %p68_p0 = scmp.ne.s32.totalorder %s17_s10, %s67_s13  ;;  %p73_p2 = scmp.lt.s32.totalorder %s67_s13, %s67_s13 }
   0x7   :  { %p74_p3 = por %p73_p2, %p72_p1 }
   0x9   :  { %p75_p4 = pnand %p74_p3, %p68_p0 }
   0xb   :  { %78 = shalt.err (!%p75_p4)
}
   0xc   :  { %19 = dma.hbm_to_vmem [thread:$0]  %s152_s0, 128, %s17_s10, [#allocation3]  }
   0xd   :  { %s87_s16 = scalar_lea.vmem %s27_s12, 128  ;;  %p92_p6 = scmp.lt.s32.totalorder %s27_s12, %s27_s12 }
   0xe   :  { %p88_p5 = scmp.ne.s32.totalorder %s27_s12, %s87_s16  ;;  %p93_p7 = scmp.lt.s32.totalorder %s87_s16, %s87_s16 }
  0x10   :  { %p94_p8 = por %p93_p7, %p92_p6 }
  0x12   :  { %p95_p9 = pnand %p94_p8, %p88_p5 }
  0x14   :  { %98 = shalt.err (!%p95_p9)
}
  0x15   :  { %29 = dma.hbm_to_vmem [thread:$0]  %s153_s1, 128, %s27_s12, [#allocation6]  }
  0x16   :  { %119 = dma.done.wait [#allocation3], 128  }
  0x17   :  { %120 = vsyncadd [#allocation3], 4294967168 }
  0x18   :  { %121 = dma.done.wait [#allocation6], 128  }
  0x19   :  { %122 = vsyncadd [#allocation6], 4294967168  ;;  %s127_s19 = smov [#allocation7]   ;;  %v36_v0 = vld [vmem:[#allocation2] sm:$0xff]  ;;  %v37_v1 = vld [vmem:[#allocation5] sm:$0xff] }
  0x1a   :  { %s46_s20 = sshll.u32 %s127_s19, 4  ;;  %v38_v2 = vadd.f32 %v37_v1, %v36_v0  ;;  %s47_s20 = int_to_ptr.vmem [resolvable:$true] %s46_s20 }
  0x1b   :  { %s99_s0 = scalar_lea.vmem %s47_s20, 128  ;;  %p104_p11 = scmp.lt.s32.totalorder %s47_s20, %s47_s20 }
  0x1c   :  { %39 = vst [vmem:[#allocation7] sm:$0xff] %v38_v2  ;;  %p100_p10 = scmp.ne.s32.totalorder %s47_s20, %s99_s0  ;;  %p105_p12 = scmp.lt.s32.totalorder %s99_s0, %s99_s0 }
  0x1e   :  { %p106_p13 = por %p105_p12, %p104_p11 }
  0x20   :  { %p107_p0 = pnand %p106_p13, %p100_p10 }
  0x22   :  { %110 = shalt.err (!%p107_p0)
}
  0x23   :  { %49 = dma.vmem_to_hbm [thread:$0]  %s47_s20, 128, %s154_s2, [#allocation4]  }
  0x24   :  { %123 = dma.done.wait [#allocation4], 128  }
  0x25   :  { %124 = vsyncadd [#allocation4], 4294967168 }
  0x26   :  { %53 = vsyncpa [#allocation3], 1 }
  0x27   :  { %54 = vsyncpa [#allocation6], 1 }
  0x28   :  { %55 = vsyncpa [#allocation4], 1 }

// kernel: tpu_custom_call.1
= control target key start
LH: loop header
LB: loop body
LE: loop exit
PB: predicated region body
PF: predicated region fallthrough
CT: control target
= control target key end

     0   :  { %10 = vsyncpa [#allocation3], 0  ;;  %s979_s0 = inlined_call_operand.hbm [shape: f32[16,32], index: 0, kind: input, shape index: {}]   ;;  %s980_s1 = inlined_call_operand.hbm [shape: f32[32,32], index: 1, kind: input, shape index: {}]   ;;  %s981_s2 = inlined_call_operand.vmem [shape: f32[1,32], index: 2, kind: input, shape index: {}]   ;;  %s982_s3 = inlined_call_operand.vmem [shape: f32[1,32], index: 3, kind: input, shape index: {}]   ;;  %s983_s4 = inlined_call_operand.vmem [shape: f32[1,32], index: 4, kind: input, shape index: {}]   ;;  %s984_s5 = inlined_call_operand.hbm [shape: f32[16,32], index: 5, kind: output, shape index: {}]  }
   0x1   :  { %11 = vsyncpa [#allocation6], 0 }
   0x2   :  { %12 = vsyncpa [#allocation4], 0  ;;  %s861_s18 = smov [#allocation2]  }
   0x3   :  { %s18_s19 = sshll.u32 %s861_s18, 4  ;;  %s19_s19 = int_to_ptr.vmem [resolvable:$true] %s18_s19 }
   0x4   :  { %s803_s20 = scalar_lea.vmem %s19_s19, 256  ;;  %p808_p1 = scmp.lt.s32.totalorder %s19_s19, %s19_s19 }
   0x5   :  { %p804_p0 = scmp.ne.s32.totalorder %s19_s19, %s803_s20  ;;  %p809_p2 = scmp.lt.s32.totalorder %s803_s20, %s803_s20 }
   0x7   :  { %p810_p3 = por %p809_p2, %p808_p1 }
   0x9   :  { %p811_p4 = pnand %p810_p3, %p804_p0 }
   0xb   :  { %814 = shalt.err (!%p811_p4)
}
   0xc   :  { %s862_s21 = smov 128   ;;  %s863_s22 = smov 8  }
   0xd   :  { %24 = dma.hbm_to_vmem [thread:$0]  %s979_s0, 256, %s19_s19, [#allocation3], %s862_s21, %s862_s21, %s863_s22  }
   0xe   :  { %s864_s25 = smov [#allocation5]  }
   0xf   :  { %s30_s26 = sshll.u32 %s864_s25, 4  ;;  %s31_s26 = int_to_ptr.vmem [resolvable:$true] %s30_s26 }
  0x10   :  { %s823_s27 = scalar_lea.vmem %s31_s26, 512  ;;  %p828_p6 = scmp.lt.s32.totalorder %s31_s26, %s31_s26 }
  0x11   :  { %p824_p5 = scmp.ne.s32.totalorder %s31_s26, %s823_s27  ;;  %p829_p7 = scmp.lt.s32.totalorder %s823_s27, %s823_s27 }
  0x13   :  { %p830_p8 = por %p829_p7, %p828_p6 }
  0x15   :  { %p831_p9 = pnand %p830_p8, %p824_p5 }
  0x17   :  { %834 = shalt.err (!%p831_p9)
}
  0x18   :  { %36 = dma.hbm_to_vmem [thread:$0]  %s980_s1, 512, %s31_s26, [#allocation6], %s862_s21, %s862_s21, %s863_s22  }
  0x19   :  { %855 = dma.done.wait [#allocation3], 256  }
  0x1a   :  { %856 = vsyncadd [#allocation3], 4294967040 }
  0x1b   :  { %857 = dma.done.wait [#allocation6], 512  }
  0x1c   :  { %858 = vsyncadd [#allocation6], 4294966784  ;;  %vm62_vm0 = vcmask 261120   ;;  %v54_v0 = vld [vmem:[#allocation5 + $0x18] sm:$0xff]  ;;  %v53_v1 = vld [vmem:[#allocation5 + $0x10] sm:$0xff]  ;;  %s865_s8 = smov [#allocation7]  }
  0x1d   :  { %v52_v2 = vld [vmem:[#allocation5 + $0x8] sm:$0xff]  ;;  %v908_v3 = vand.u32 4294901760, %v54_v0  ;;  %v910_v4 = vand.u32 4294901760, %v53_v1  ;;  %v51_v6 = vld [vmem:[#allocation5] sm:$0xff]  ;;  %v49_v7 = vld [vmem:[#allocation2] sm:$0xff]  ;;  %s664_s9 = sshll.u32 %s865_s8, 4  ;;  %s665_s9 = int_to_ptr.vmem [resolvable:$true] %s664_s9 }
  0x1e   :  { %v912_v5 = vand.u32 4294901760, %v52_v2  ;;  %v50_v8 = vld [vmem:[#allocation2 + $0x8] sm:$0xff]  ;;  %v914_v9 = vand.u32 4294901760, %v51_v6  ;;  %v64_v10 = vsel %vm62_vm0, %v49_v7, 0  ;;  %v677_v39 = vld [vmem:[%s981_s2] ss:$0 sm:$0xff]  ;;  %p840_p11 = scmp.lt.s32.totalorder %s665_s9, %s665_s9 }
  0x1f   :  { %v67_v11 = vsel %vm62_vm0, %v50_v8, 0  ;;  %716 = vmatprep.subr.mxu0 %v908_v3  ;;  %v184_v12 = vsub.f32 %v54_v0, %v908_v3  ;;  %v920_v13 = vand.u32 4294901760, %v64_v10  ;;  %v191_v14 = vsub.f32 %v53_v1, %v910_v4 }
  0x20   :  { %v923_v15 = vand.u32 4294901760, %v67_v11  ;;  %717 = vmatpush3.msra.mxu0 %v908_v3  ;;  %v198_v16 = vsub.f32 %v52_v2, %v912_v5  ;;  %v205_v17 = vsub.f32 %v51_v6, %v914_v9 }
  0x21   :  { %718 = vmatprep.subr.mxu0 %v910_v4  ;;  %v185_v18 = vand.u32 4294901760, %v184_v12  ;;  %v139_v19 = vsub.f32 %v64_v10, %v920_v13  ;;  %v192_v20 = vand.u32 4294901760, %v191_v14  ;;  %735 = vmatprep.mubr.f32.mxu1 %v920_v13 }
  0x22   :  { %v149_v21 = vsub.f32 %v67_v11, %v923_v15  ;;  %719 = vmatpush3.msra.mxu0 %v910_v4  ;;  %v199_v22 = vand.u32 4294901760, %v198_v16  ;;  %v206_v23 = vand.u32 4294901760, %v205_v17 }
  0x23   :  { %720 = vmatprep.subr.mxu0 %v912_v5  ;;  %v186_v24 = vsub.f32 %v184_v12, %v185_v18  ;;  %v140_v25 = vand.u32 4294901760, %v139_v19  ;;  %v193_v26 = vsub.f32 %v191_v14, %v192_v20 }
  0x24   :  { %v150_v27 = vand.u32 4294901760, %v149_v21  ;;  %721 = vmatpush3.msra.mxu0 %v912_v5  ;;  %v200_v28 = vsub.f32 %v198_v16, %v199_v22  ;;  %v207_v29 = vsub.f32 %v205_v17, %v206_v23 }
  0x25   :  { %722 = vmatprep.subr.mxu0 %v914_v9  ;;  %v187_v30 = vand.u32 4294901760, %v186_v24  ;;  %v141_v31 = vsub.f32 %v139_v19, %v140_v25  ;;  %v194_v32 = vand.u32 4294901760, %v193_v26 }
  0x26   :  { %v151_v33 = vsub.f32 %v149_v21, %v150_v27  ;;  %723 = vmatpush3.msra.mxu0 %v914_v9  ;;  %v201_v36 = vand.u32 4294901760, %v200_v28  ;;  %v208_v37 = vand.u32 4294901760, %v207_v29 }
  0x27   :  { %727 = vmatprep.subr.mxu1 %v187_v30  ;;  %v142_v34 = vand.u32 4294901760, %v141_v31  ;;  %738 = vmatprep.subr.mxu0 %v184_v12 }
  0x28   :  { %v152_v35 = vand.u32 4294901760, %v151_v33  ;;  %728 = vmatpush3.msra.mxu1 %v187_v30  ;;  %v678_v33 = vld [vmem:[%s982_s3] ss:$0 sm:$0xff]  ;;  %s835_s3 = scalar_lea.vmem %s665_s9, 256 }
  0x29   :  { %724 = vmatprep.mubr.f32.mxu0 %v142_v34  ;;  %729 = vmatprep.subr.mxu1 %v194_v32  ;;  %p836_p10 = scmp.ne.s32.totalorder %s665_s9, %s835_s3  ;;  %p841_p12 = scmp.lt.s32.totalorder %s835_s3, %s835_s3 }
  0x2a   :  { %725 = vmatmul.mubr.f32.vlgmr.msra.gmra.mxu0 %v152_v35  ;;  %730 = vmatpush3.msra.mxu1 %v194_v32  ;;  %v679_v35 = vld [vmem:[%s983_s4] ss:$0 sm:$0xff] }
  0x2b   :  { %739 = vmatpush3.msra.mxu0 %v184_v12  ;;  %731 = vmatprep.subr.mxu1 %v201_v36  ;;  %p842_p13 = por %p841_p12, %p840_p11 }
  0x2c   :  { %740 = vmatprep.subr.mxu0 %v191_v14  ;;  %732 = vmatpush3.msra.mxu1 %v201_v36 }
  0x2d   :  { %741 = vmatpush3.msra.mxu0 %v191_v14  ;;  %733 = vmatprep.subr.mxu1 %v208_v37  ;;  %p843_p0 = pnand %p842_p13, %p836_p10 }
  0x2e   :  { %742 = vmatprep.subr.mxu0 %v198_v16  ;;  %734 = vmatpush3.msra.mxu1 %v208_v37 }
  0x2f   :  { %743 = vmatpush3.msra.mxu0 %v198_v16  ;;  %736 = vmatmul.mubr.f32.vlgmr.msra.gmra.mxu1 %v923_v15 }
  0x30   :  { %744 = vmatprep.subr.mxu0 %v205_v17  ;;  %749 = vmatprep.subr.mxu1 %v908_v3 }
  0x31   :  { %745 = vmatpush3.msra.mxu0 %v205_v17  ;;  %746 = vmatprep.mubr.f32.mxu0 %v139_v19 }
  0x32   :  { %750 = vmatpush3.msra.mxu1 %v908_v3  ;;  %747 = vmatmul.mubr.f32.vlgmr.msra.gmra.mxu0 %v149_v21 }
  0x33   :  { %751 = vmatprep.subr.mxu1 %v910_v4  ;;  %760 = vmatprep.subr.mxu0 %v185_v18 }
  0x34   :  { %752 = vmatpush3.msra.mxu1 %v910_v4  ;;  %761 = vmatpush3.msra.mxu0 %v185_v18 }
  0x35   :  { %753 = vmatprep.subr.mxu1 %v912_v5  ;;  %762 = vmatprep.subr.mxu0 %v192_v20 }
  0x36   :  { %754 = vmatpush3.msra.mxu1 %v912_v5  ;;  %763 = vmatpush3.msra.mxu0 %v192_v20 }
  0x37   :  { %755 = vmatprep.subr.mxu1 %v914_v9  ;;  %764 = vmatprep.subr.mxu0 %v199_v22 }
  0x38   :  { %756 = vmatpush3.msra.mxu1 %v914_v9  ;;  %757 = vmatprep.mubr.f32.mxu1 %v140_v25 }
  0x39   :  { %765 = vmatpush3.msra.mxu0 %v199_v22  ;;  %758 = vmatmul.mubr.f32.vlgmr.msra.gmra.mxu1 %v150_v27 }
  0x3a   :  { %766 = vmatprep.subr.mxu0 %v206_v23  ;;  %771 = vmatprep.subr.mxu1 %v908_v3 }
  0x3b   :  { %767 = vmatpush3.msra.mxu0 %v206_v23  ;;  %768 = vmatprep.mubr.f32.mxu0 %v920_v13 }
  0x3c   :  { %772 = vmatpush3.msra.mxu1 %v908_v3  ;;  %769 = vmatmul.mubr.f32.vlgmr.msra.gmra.mxu0 %v923_v15 }
  0x3d   :  { %773 = vmatprep.subr.mxu1 %v910_v4  ;;  %779 = vmatprep.mubr.f32.mxu1 %v920_v13 }
  0x3e   :  { %774 = vmatpush3.msra.mxu1 %v910_v4 }
  0x3f   :  { %775 = vmatprep.subr.mxu1 %v912_v5 }
  0x40   :  { %776 = vmatpush3.msra.mxu1 %v912_v5 }
  0x41   :  { %777 = vmatprep.subr.mxu1 %v914_v9 }
  0x42   :  { %778 = vmatpush3.msra.mxu1 %v914_v9 }
  0x43   :  { %780 = vmatmul.mubr.f32.vlgmr.msra.gmra.mxu1 %v923_v15 }
  0xea   :  { %v726_v38 = vpop.f32.mrf.mxu0 }
  0xeb   :  { %v155_v42 = vadd.f32 %v726_v38, %v677_v39 }
  0xec   :  { %v144_v40 = vpop.f32.mrf.mxu0 }
  0xed   :  { %v145_v43 = vadd.f32 %v677_v39, %v144_v40 }
  0xef   :  { %v737_v41 = vpop.f32.mrf.mxu1 }
  0xf0   :  { %v252_v46 = vadd.f32 %v737_v41, %v155_v42 }
  0xf1   :  { %v245_v44 = vpop.f32.mrf.mxu1 }
  0xf2   :  { %v748_v45 = vpop.f32.mrf.mxu0  ;;  %v246_v48 = vadd.f32 %v245_v44, %v145_v43 }
  0xf3   :  { %v339_v50 = vadd.f32 %v748_v45, %v252_v46 }
  0xf4   :  { %v331_v49 = vpop.f32.mrf.mxu0 }
  0xf5   :  { %v332_v53 = vadd.f32 %v331_v49, %v246_v48 }
  0xf9   :  { %v759_v47 = vpop.f32.mrf.mxu1 }
  0xfa   :  { %v424_v54 = vadd.f32 %v759_v47, %v339_v50 }
  0xfb   :  { %v415_v51 = vpop.f32.mrf.mxu1 }
  0xfc   :  { %v770_v52 = vpop.f32.mrf.mxu0  ;;  %v416_v55 = vadd.f32 %v415_v51, %v332_v53 }
  0xfd   :  { %v513_v57 = vadd.f32 %v770_v52, %v424_v54 }
  0xfe   :  { %v506_v56 = vpop.f32.mrf.mxu0 }
  0xff   :  { %v507_v59 = vadd.f32 %v506_v56, %v416_v55 }
 0x103   :  { %v781_v58 = vpop.f32.mrf.mxu1 }
 0x104   :  { %v594_v60 = vadd.f32 %v781_v58, %v513_v57 }
 0x105   :  { %v587_v61 = vpop.f32.mrf.mxu1 }
 0x106   :  { %v602_v62 = vmul.f32 0.70710677, %v594_v60  ;;  %v588_v63 = vadd.f32 %v587_v61, %v507_v59  ;;  %v600_v4 = vmul.f32 0.5, %v594_v60 }
 0x108   :  { %787 = verf.f32 %v602_v62  ;;  %v601_v0 = vmul.f32 0.70710677, %v588_v63  ;;  %v599_v5 = vmul.f32 0.5, %v588_v63 }
 0x10a   :  { %789 = verf.f32 %v601_v0 }
 0x115   :  { %v788_v1 = vpop.eup %787 }
 0x116   :  { %v606_v2 = vadd.f32 1.0, %v788_v1 }
 0x117   :  { %v790_v3 = vpop.eup %789 }
 0x118   :  { %v605_v6 = vadd.f32 1.0, %v790_v3  ;;  %v608_v7 = vmul.f32 %v606_v2, %v600_v4 }
 0x11a   :  { %v607_v8 = vmul.f32 %v605_v6, %v599_v5  ;;  %v618_v12 = vmul.f32 %v608_v7, %v608_v7  ;;  %v612_v13 = vsel %vm62_vm0, %v608_v7, 0.0 }
 0x11c   :  { %v609_v9 = vsel %vm62_vm0, %v607_v8, 0.0  ;;  %v617_v10 = vmul.f32 %v607_v8, %v607_v8  ;;  %v622_v14 = vsel %vm62_vm0, %v618_v12, 0.0 }
 0x11d   :  { %610 = vadd.xlane.f32.xlu0 %v609_v9 }
 0x11e   :  { %v619_v11 = vsel %vm62_vm0, %v617_v10, 0.0 }
 0x11f   :  { %620 = vadd.xlane.f32.xlu1 %v619_v11 }
 0x121   :  { %613 = vadd.xlane.f32.xlu0 %v612_v13 }
 0x123   :  { %623 = vadd.xlane.f32.xlu1 %v622_v14 }
 0x1a6   :  { %v611_v15 = vpop.xlane.xlu0 %610 }
 0x1a7   :  { %v615_v16 = vmul.f32 0.03125, %v611_v15 }
 0x1a8   :  { %v621_v17 = vpop.xlane.xlu1 %620 }
 0x1a9   :  { %v627_v18 = vmul.f32 %v615_v16, %v615_v16  ;;  %v625_v19 = vmul.f32 0.03125, %v621_v17  ;;  %v633_v31 = vsub.f32 %v607_v8, %v615_v16 }
 0x1aa   :  { %v614_v20 = vpop.xlane.xlu0 %613 }
 0x1ab   :  { %v629_v21 = vsub.f32 %v625_v19, %v627_v18  ;;  %v616_v22 = vmul.f32 0.03125, %v614_v20 }
 0x1ac   :  { %v624_v23 = vpop.xlane.xlu1 %623 }
 0x1ad   :  { %v631_v24 = vmax.f32 %v629_v21, 0.0  ;;  %v628_v25 = vmul.f32 %v616_v22, %v616_v22  ;;  %v626_v26 = vmul.f32 0.03125, %v624_v23  ;;  %v634_v36 = vsub.f32 %v608_v7, %v616_v22 }
 0x1af   :  { %v635_v27 = vadd.f32 1e-05, %v631_v24  ;;  %v630_v28 = vsub.f32 %v626_v26, %v628_v25 }
 0x1b1   :  { %791 = vrsqrt.f32 %v635_v27  ;;  %v632_v29 = vmax.f32 %v630_v28, 0.0 }
 0x1b3   :  { %v636_v30 = vadd.f32 1e-05, %v632_v29 }
 0x1b5   :  { %793 = vrsqrt.f32 %v636_v30 }
 0x1be   :  { %v792_v32 = vpop.eup %791 }
 0x1bf   :  { %v639_v34 = vmul.f32 %v792_v32, %v633_v31 }
 0x1c1   :  { %v647_v37 = vmul.f32 %v678_v33, %v639_v34 }
 0x1c2   :  { %v794_v38 = vpop.eup %793 }
 0x1c3   :  { %v640_v39 = vmul.f32 %v794_v38, %v634_v36  ;;  %v655_v40 = vadd.f32 %v679_v35, %v647_v37 }
 0x1c5   :  { %v648_v41 = vmul.f32 %v678_v33, %v640_v39  ;;  %657 = vst.msk [vmem:[#allocation7] sm:$0xff] %vm62_vm0, %v655_v40 }
 0x1c7   :  { %v656_v42 = vadd.f32 %v679_v35, %v648_v41 }
 0x1c9   :  { %658 = vst.msk [vmem:[#allocation7 + $0x8] sm:$0xff] %vm62_vm0, %v656_v42 }
 0x1ca   :  { %846 = shalt.err (!%p843_p0)
}
 0x1cb   :  { %670 = dma.vmem_to_hbm [thread:$0]  %s665_s9, 256, %s984_s5, [#allocation4], %s862_s21, %s862_s21, %s863_s22  }
 0x1cc   :  { %859 = dma.done.wait [#allocation4], 256  }
 0x1cd   :  { %860 = vsyncadd [#allocation4], 4294967040 }
 0x1ce   :  { %674 = vsyncpa [#allocation3], 1 }
 0x1cf   :  { %675 = vsyncpa [#allocation6], 1 }
 0x1d0   :  { %676 = vsyncpa [#allocation4], 1 }

</bundles_post_ra>
